<compile_context>
chip_gen: v6e
topology: v6e:2x2x1
jax: 0.10.0
libtpu: 0.0.40
codegen_flags: <defaults>
</compile_context>

<pallas_src>
import functools

import jax
import jax.numpy as jnp
from jax.experimental import pallas as pl
from jax.experimental.pallas import tpu as pltpu

F32 = jnp.float32


# ----------------------------------------------------------------------------- kernel
def _fused_forward_kernel(*refs, num_gat_layers):
    """Whole ActorCritic forward in a single kernel; everything stays in VMEM."""
    pi_ref, v_ref = refs[-2], refs[-1]
    ins = refs[:-2]

    x_ref, adj_ref, gpm_ref = ins[0], ins[1], ins[2]
    off = 3
    gat_refs = [ins[off + 3 * i: off + 3 * i + 3] for i in range(num_gat_layers)]
    off += 3 * num_gat_layers
    c_w1, c_w2, c_w3, c_aux = ins[off:off + 4]
    off += 4
    a_w1a, a_w1b, a_w2, a_w3, a_aux = ins[off:off + 5]
    off += 5
    csel_ref, psel_ref, mask_ref = ins[off:off + 3]

    neg = jnp.float32(-1e30)
    adj_pos = adj_ref[...] > 0.0                                  # reused by all layers

    def layernorm(z, g, b):
        mu = jnp.mean(z, axis=-1, keepdims=True)
        var = jnp.mean((z - mu) ** 2, axis=-1, keepdims=True)
        return (z - mu) * jax.lax.rsqrt(var + 1e-5) * g + b

    # ---------------- GAT stack (heads=1, LeakyReLU(0.2), self-loops in adj) -----
    h = x_ref[...]                                                # [N, Din]
    for li, (w_ref, a_ref, b_ref) in enumerate(gat_refs):
        h1 = jnp.dot(h, w_ref[...], preferred_element_type=jnp.float32)   # [N, D]
        a = a_ref[...]                                            # [2, D]: row0=a_dst row1=a_src
        # attention coefficients on the VPU (multiply + lane reduce), MXU stays free
        e_dst = jnp.sum(h1 * a[0:1, :], axis=-1, keepdims=True)   # [N, 1]
        e_src = jnp.sum(h1 * a[1:2, :], axis=-1, keepdims=True)   # [N, 1]
        logits = e_dst + jnp.transpose(e_src)                     # [N, N]
        logits = jnp.where(logits > 0, logits, 0.2 * logits)      # LeakyReLU(0.2)
        masked = jnp.where(adj_pos, logits, neg)
        m = jnp.max(masked, axis=-1, keepdims=True)
        p = jnp.exp(masked - m)                                   # masked entries underflow to 0
        inv = pl.reciprocal(jnp.sum(p, axis=-1, keepdims=True), approx=True)
        out = jnp.dot(p * inv, h1, preferred_element_type=jnp.float32) + b_ref[...]
        if li < num_gat_layers - 1:
            out = jnp.where(out > 0, out, jnp.exp(out) - 1.0)     # ELU
        h = out
    h_nodes = h                                                   # [N, Dout]

    # ---------------- critic: mean pooling folded into a single matmul ----------
    h_global = jnp.dot(gpm_ref[...], h_nodes,
                       preferred_element_type=jnp.float32)        # [1, Dout]
    ca = c_aux[...]                                               # [8, H]
    hc = jnp.dot(h_global, c_w1[...], preferred_element_type=jnp.float32) + ca[0:1, :]
    hc = jnp.tanh(layernorm(hc, ca[1:2, :], ca[2:3, :]))
    hc = jnp.dot(hc, c_w2[...], preferred_element_type=jnp.float32) + ca[3:4, :]
    hc = jnp.tanh(layernorm(hc, ca[4:5, :], ca[5:6, :]))
    v_ref[...] = (jnp.dot(hc, c_w3[...], preferred_element_type=jnp.float32)
                  + ca[6:7, 0:1])                                 # [1, 1]

    # ---------------- actor: in-kernel gather via one-hot matmuls ---------------
    cand_feat = jnp.dot(csel_ref[...], h_nodes,
                        preferred_element_type=jnp.float32)       # [C, Dout] = h_nodes[candidate]
    pooled_sel = jnp.dot(psel_ref[...], h_nodes,
                         preferred_element_type=jnp.float32)      # [C, Dout] = h_pooled[cand // n_m]
    aa = a_aux[...]                                               # [8, H]
    # first layer with split weights == Linear on concat([cand_feat, pooled_sel])
    ha = (jnp.dot(cand_feat, a_w1a[...], preferred_element_type=jnp.float32)
          + jnp.dot(pooled_sel, a_w1b[...], preferred_element_type=jnp.float32)
          + aa[0:1, :])
    ha = jnp.tanh(layernorm(ha, aa[1:2, :], aa[2:3, :]))
    ha = jnp.dot(ha, a_w2[...], preferred_element_type=jnp.float32) + aa[3:4, :]
    ha = jnp.tanh(layernorm(ha, aa[4:5, :], aa[5:6, :]))
    scores = jnp.dot(ha, a_w3[...], preferred_element_type=jnp.float32) + aa[6:7, 0:1]
    scores = jnp.clip(scores, -10.0, 10.0)                        # [C, 1]
    scores_row = jnp.transpose(scores)                            # [1, C] lane-dense

    mask = mask_ref[...]                                          # [1, C] float 0/1
    # TODO(synk): valid_count == 0 raises (ipdb + ValueError) in PyTorch; no kernel equivalent.
    masked_s = jnp.where(mask > 0, scores_row, neg)
    ms = jnp.max(masked_s, axis=-1, keepdims=True)
    es = jnp.exp(masked_s - ms)                                   # masked lanes are exactly 0
    soft = es / jnp.sum(es, axis=-1, keepdims=True)               # exact normalization for pi
    valid = jnp.sum((mask > 0.5).astype(jnp.int32), axis=-1, keepdims=True)
    pi_ref[...] = jnp.where(valid == 1, mask, soft)               # one-hot if single valid


# ----------------------------------------------------------------------------- params
def _mlp_packed(key, d_in, d_hidden, split_first=False):
    """Linear-LN-tanh x2 -> Linear; 1xD params packed into one [8, H] array."""
    ks = jax.random.split(key, 3)
    s = 0.1
    w1 = s * jax.random.normal(ks[0], (d_in, d_hidden), F32)
    w2 = s * jax.random.normal(ks[1], (d_hidden, d_hidden), F32)
    w3 = s * jax.random.normal(ks[2], (d_hidden, 1), F32)
    # rows: 0 b1, 1 gamma1, 2 beta1, 3 b2, 4 gamma2, 5 beta2, 6 [b3, 0...], 7 unused
    aux = jnp.zeros((8, d_hidden), F32)
    aux = aux.at[1, :].set(1.0)
    aux = aux.at[4, :].set(1.0)
    if split_first:
        half = d_in // 2
        return (w1[:half], w1[half:], w2, w3, aux)
    return (w1, w2, w3, aux)


def init_actor_critic_params(key, node_input_dim, graph_hidden_dim, graph_output_dim,
                             mlp_hidden_dim, num_layers=3):
    keys = jax.random.split(key, num_layers + 2)
    dims = [node_input_dim] + [graph_hidden_dim] * (num_layers - 1) + [graph_output_dim]
    gat = []
    for i in range(num_layers):
        ks = jax.random.split(keys[i], 2)
        s = 0.1
        w = s * jax.random.normal(ks[0], (dims[i], dims[i + 1]), F32)
        a2 = s * jax.random.normal(ks[1], (2, dims[i + 1]), F32)   # row0=a_dst, row1=a_src
        b = jnp.zeros((1, dims[i + 1]), F32)
        gat.append((w, a2, b))
    critic = _mlp_packed(keys[-2], graph_output_dim, mlp_hidden_dim)
    actor = _mlp_packed(keys[-1], 2 * graph_output_dim, mlp_hidden_dim, split_first=True)
    return {"gat": gat, "critic": critic, "actor": actor}


# ----------------------------------------------------------------------------- forward
def actor_critic_forward(params, x, edge_index, graph_pool, candidate, mask, *, n_m):
    n = x.shape[0]

    # Glue (tiny, input-side only): dense adjacency (src -> dst) with self-loops.
    adj = jnp.zeros((n, n), F32)
    adj = adj.at[edge_index[1], edge_index[0]].set(1.0)
    adj = adj.at[jnp.arange(n), jnp.arange(n)].set(1.0)

    gp_mean = jnp.mean(graph_pool, axis=0, keepdims=True)          # [1, N] -> h_global row

    candidate = candidate.reshape(-1)
    mask = mask.reshape(-1)
    c = candidate.shape[0]
    csel = jax.nn.one_hot(candidate, n, dtype=F32)                 # [C, N]  node selection
    psel = jnp.take(graph_pool, candidate // n_m, axis=0)          # [C, N]  pooled-row selection
    mask_row = mask.astype(F32).reshape(1, -1)                     # [1, C]

    cw1, cw2, cw3, caux = params["critic"]
    aw1a, aw1b, aw2, aw3, aaux = params["actor"]

    inputs = [x, adj, gp_mean]
    for (w, a2, b) in params["gat"]:
        inputs += [w, a2, b]
    inputs += [cw1, cw2, cw3, caux, aw1a, aw1b, aw2, aw3, aaux, csel, psel, mask_row]

    vmem = pl.BlockSpec(memory_space=pltpu.MemorySpace.VMEM)
    kern = functools.partial(_fused_forward_kernel, num_gat_layers=len(params["gat"]))
    pi, v = pl.pallas_call(
        kern,
        out_shape=(jax.ShapeDtypeStruct((1, c), F32),
                   jax.ShapeDtypeStruct((1, 1), F32)),
        in_specs=[vmem] * len(inputs),
        out_specs=(vmem, vmem),
    )(*inputs)
    return pi, v[:, 0]                                             # pi: [1, C], v: [1]


# ----------------------------------------------------------------------------- main
if __name__ == "__main__":
    n_j, n_m = 3, 2                      # 3 jobs x 2 machines -> 6 nodes
    node_input_dim = 4
    graph_hidden_dim = 8
    graph_output_dim = 8
    mlp_hidden_dim = 16
    n_nodes = n_j * n_m

    key = jax.random.PRNGKey(0)
    k_param, k_x = jax.random.split(key)
    params = init_actor_critic_params(k_param, node_input_dim, graph_hidden_dim,
                                      graph_output_dim, mlp_hidden_dim, num_layers=3)

    x = jax.random.normal(k_x, (n_nodes, node_input_dim), F32)

    # precedence edges within each job (both directions) plus a couple of cross edges
    edge_index = jnp.array(
        [[0, 1, 2, 3, 4, 5, 0, 2],
         [1, 0, 3, 2, 5, 4, 2, 4]], dtype=jnp.int32)

    # mean pooling per job: graph_pool[j, n] = 1/n_m for nodes of job j
    graph_pool = jnp.zeros((n_j, n_nodes), F32)
    for j in range(n_j):
        graph_pool = graph_pool.at[j, j * n_m:(j + 1) * n_m].set(1.0 / n_m)

    candidate = jnp.array([0, 2, 4], dtype=jnp.int32)       # one candidate op per job
    mask = jnp.array([True, True, False])

    forward = jax.jit(actor_critic_forward, static_argnames=("n_m",))
    pi, v = forward(params, x, edge_index, graph_pool, candidate, mask, n_m=n_m)
    pi = jax.block_until_ready(pi)
    v = jax.block_until_ready(v)

    assert pi.shape == (1, candidate.shape[0])
    assert v.shape == (1,)
    assert jnp.isfinite(pi).all() and jnp.isfinite(v).all()
    assert abs(float(jnp.sum(pi)) - 1.0) < 1e-5
    assert float(pi[0, 2]) == 0.0        # masked-out candidate gets zero probability

    print("KERNEL_OK")
</pallas_src>

<mosaic_0001>
module attributes {stable_mosaic.version = 11 : i64} {
  func.func @_fused_forward_kernel(%arg0: memref<6x4xf32, #tpu.memory_space<vmem>>, %arg1: memref<6x6xf32, #tpu.memory_space<vmem>>, %arg2: memref<1x6xf32, #tpu.memory_space<vmem>>, %arg3: memref<4x8xf32, #tpu.memory_space<vmem>>, %arg4: memref<2x8xf32, #tpu.memory_space<vmem>>, %arg5: memref<1x8xf32, #tpu.memory_space<vmem>>, %arg6: memref<8x8xf32, #tpu.memory_space<vmem>>, %arg7: memref<2x8xf32, #tpu.memory_space<vmem>>, %arg8: memref<1x8xf32, #tpu.memory_space<vmem>>, %arg9: memref<8x8xf32, #tpu.memory_space<vmem>>, %arg10: memref<2x8xf32, #tpu.memory_space<vmem>>, %arg11: memref<1x8xf32, #tpu.memory_space<vmem>>, %arg12: memref<8x16xf32, #tpu.memory_space<vmem>>, %arg13: memref<16x16xf32, #tpu.memory_space<vmem>>, %arg14: memref<16x1xf32, #tpu.memory_space<vmem>>, %arg15: memref<8x16xf32, #tpu.memory_space<vmem>>, %arg16: memref<8x16xf32, #tpu.memory_space<vmem>>, %arg17: memref<8x16xf32, #tpu.memory_space<vmem>>, %arg18: memref<16x16xf32, #tpu.memory_space<vmem>>, %arg19: memref<16x1xf32, #tpu.memory_space<vmem>>, %arg20: memref<8x16xf32, #tpu.memory_space<vmem>>, %arg21: memref<3x6xf32, #tpu.memory_space<vmem>>, %arg22: memref<3x6xf32, #tpu.memory_space<vmem>>, %arg23: memref<1x3xf32, #tpu.memory_space<vmem>>, %arg24: memref<1x3xf32, #tpu.memory_space<vmem>>, %arg25: memref<1x1xf32, #tpu.memory_space<vmem>>) attributes {dimension_semantics = [], scalar_prefetch = 0 : i64, scratch_operands = 0 : i64, tpu.core_type = #tpu.core_type<tc>} {
    %c0 = arith.constant 0 : index
    %c0_0 = arith.constant 0 : index
    %0 = vector.load %arg1[%c0, %c0_0] : memref<6x6xf32, #tpu.memory_space<vmem>>, vector<6x6xf32>
    %cst = arith.constant 0.000000e+00 : f32
    %1 = vector.broadcast %cst : f32 to vector<6x6xf32>
    %2 = arith.cmpf ogt, %0, %1 : vector<6x6xf32>
    %c0_1 = arith.constant 0 : index
    %c0_2 = arith.constant 0 : index
    %3 = vector.load %arg0[%c0_1, %c0_2] : memref<6x4xf32, #tpu.memory_space<vmem>>, vector<6x4xf32>
    %c0_3 = arith.constant 0 : index
    %c0_4 = arith.constant 0 : index
    %4 = vector.load %arg3[%c0_3, %c0_4] : memref<4x8xf32, #tpu.memory_space<vmem>>, vector<4x8xf32>
    %cst_5 = arith.constant dense<0.000000e+00> : vector<6x8xf32>
    %5 = tpu.matmul %3, %4, %cst_5 {dimension_numbers = #tpu.dot_dimension_numbers<[1], [0], [0], [1], [0, 0, 1, 1], [], []>} : vector<6x4xf32>, vector<4x8xf32>, vector<6x8xf32> -> vector<6x8xf32>
    %c0_6 = arith.constant 0 : index
    %c0_7 = arith.constant 0 : index
    %6 = vector.load %arg4[%c0_6, %c0_7] : memref<2x8xf32, #tpu.memory_space<vmem>>, vector<2x8xf32>
    %7 = vector.extract_strided_slice %6 {offsets = [0, 0], sizes = [1, 8], strides = [1, 1]} : vector<2x8xf32> to vector<1x8xf32>
    %8 = vector.broadcast %7 : vector<1x8xf32> to vector<6x8xf32>
    %9 = arith.mulf %5, %8 : vector<6x8xf32>
    %cst_8 = arith.constant dense<0.000000e+00> : vector<6xf32>
    %10 = vector.multi_reduction <add>, %9, %cst_8 [1] : vector<6x8xf32> to vector<6xf32>
    %11 = vector.shape_cast %10 : vector<6xf32> to vector<6x1xf32>
    %12 = vector.extract_strided_slice %6 {offsets = [1, 0], sizes = [1, 8], strides = [1, 1]} : vector<2x8xf32> to vector<1x8xf32>
    %13 = vector.broadcast %12 : vector<1x8xf32> to vector<6x8xf32>
    %14 = arith.mulf %5, %13 : vector<6x8xf32>
    %cst_9 = arith.constant dense<0.000000e+00> : vector<6xf32>
    %15 = vector.multi_reduction <add>, %14, %cst_9 [1] : vector<6x8xf32> to vector<6xf32>
    %16 = vector.shape_cast %15 : vector<6xf32> to vector<6x1xf32>
    %17 = tpu.transpose %16, [1, 0] : vector<6x1xf32> -> vector<1x6xf32>
    %18 = vector.broadcast %11 : vector<6x1xf32> to vector<6x6xf32>
    %19 = vector.broadcast %17 : vector<1x6xf32> to vector<6x6xf32>
    %20 = arith.addf %18, %19 : vector<6x6xf32>
    %cst_10 = arith.constant 0.000000e+00 : f32
    %21 = vector.broadcast %cst_10 : f32 to vector<6x6xf32>
    %22 = arith.cmpf ogt, %20, %21 : vector<6x6xf32>
    %cst_11 = arith.constant 2.000000e-01 : f32
    %23 = vector.broadcast %cst_11 : f32 to vector<6x6xf32>
    %24 = arith.mulf %23, %20 : vector<6x6xf32>
    %25 = arith.select %22, %20, %24 : vector<6x6xi1>, vector<6x6xf32>
    %cst_12 = arith.constant -1.000000e+30 : f32
    %26 = vector.broadcast %cst_12 : f32 to vector<6x6xf32>
    %27 = arith.select %2, %25, %26 : vector<6x6xi1>, vector<6x6xf32>
    %cst_13 = arith.constant dense<0xFF800000> : vector<6xf32>
    %28 = vector.multi_reduction <maximumf>, %27, %cst_13 [1] : vector<6x6xf32> to vector<6xf32>
    %29 = vector.shape_cast %28 : vector<6xf32> to vector<6x1xf32>
    %30 = vector.broadcast %29 : vector<6x1xf32> to vector<6x6xf32>
    %31 = arith.subf %27, %30 : vector<6x6xf32>
    %32 = math.exp %31 : vector<6x6xf32>
    %cst_14 = arith.constant dense<0.000000e+00> : vector<6xf32>
    %33 = vector.multi_reduction <add>, %32, %cst_14 [1] : vector<6x6xf32> to vector<6xf32>
    %34 = vector.shape_cast %33 : vector<6xf32> to vector<6x1xf32>
    %35 = tpu.reciprocal %34 {approx = true} : vector<6x1xf32> -> vector<6x1xf32>
    %36 = vector.broadcast %35 : vector<6x1xf32> to vector<6x6xf32>
    %37 = arith.mulf %32, %36 : vector<6x6xf32>
    %cst_15 = arith.constant dense<0.000000e+00> : vector<6x8xf32>
    %38 = tpu.matmul %37, %5, %cst_15 {dimension_numbers = #tpu.dot_dimension_numbers<[1], [0], [0], [1], [0, 0, 1, 1], [], []>} : vector<6x6xf32>, vector<6x8xf32>, vector<6x8xf32> -> vector<6x8xf32>
    %c0_16 = arith.constant 0 : index
    %c0_17 = arith.constant 0 : index
    %39 = vector.load %arg5[%c0_16, %c0_17] : memref<1x8xf32, #tpu.memory_space<vmem>>, vector<1x8xf32>
    %40 = vector.broadcast %39 : vector<1x8xf32> to vector<6x8xf32>
    %41 = arith.addf %38, %40 : vector<6x8xf32>
    %cst_18 = arith.constant 0.000000e+00 : f32
    %42 = vector.broadcast %cst_18 : f32 to vector<6x8xf32>
    %43 = arith.cmpf ogt, %41, %42 : vector<6x8xf32>
    %44 = math.exp %41 : vector<6x8xf32>
    %cst_19 = arith.constant 1.000000e+00 : f32
    %45 = vector.broadcast %cst_19 : f32 to vector<6x8xf32>
    %46 = arith.subf %44, %45 : vector<6x8xf32>
    %47 = arith.select %43, %41, %46 : vector<6x8xi1>, vector<6x8xf32>
    %c0_20 = arith.constant 0 : index
    %c0_21 = arith.constant 0 : index
    %48 = vector.load %arg6[%c0_20, %c0_21] : memref<8x8xf32, #tpu.memory_space<vmem>>, vector<8x8xf32>
    %cst_22 = arith.constant dense<0.000000e+00> : vector<6x8xf32>
    %49 = tpu.matmul %47, %48, %cst_22 {dimension_numbers = #tpu.dot_dimension_numbers<[1], [0], [0], [1], [0, 0, 1, 1], [], []>} : vector<6x8xf32>, vector<8x8xf32>, vector<6x8xf32> -> vector<6x8xf32>
    %c0_23 = arith.constant 0 : index
    %c0_24 = arith.constant 0 : index
    %50 = vector.load %arg7[%c0_23, %c0_24] : memref<2x8xf32, #tpu.memory_space<vmem>>, vector<2x8xf32>
    %51 = vector.extract_strided_slice %50 {offsets = [0, 0], sizes = [1, 8], strides = [1, 1]} : vector<2x8xf32> to vector<1x8xf32>
    %52 = vector.broadcast %51 : vector<1x8xf32> to vector<6x8xf32>
    %53 = arith.mulf %49, %52 : vector<6x8xf32>
    %cst_25 = arith.constant dense<0.000000e+00> : vector<6xf32>
    %54 = vector.multi_reduction <add>, %53, %cst_25 [1] : vector<6x8xf32> to vector<6xf32>
    %55 = vector.shape_cast %54 : vector<6xf32> to vector<6x1xf32>
    %56 = vector.extract_strided_slice %50 {offsets = [1, 0], sizes = [1, 8], strides = [1, 1]} : vector<2x8xf32> to vector<1x8xf32>
    %57 = vector.broadcast %56 : vector<1x8xf32> to vector<6x8xf32>
    %58 = arith.mulf %49, %57 : vector<6x8xf32>
    %cst_26 = arith.constant dense<0.000000e+00> : vector<6xf32>
    %59 = vector.multi_reduction <add>, %58, %cst_26 [1] : vector<6x8xf32> to vector<6xf32>
    %60 = vector.shape_cast %59 : vector<6xf32> to vector<6x1xf32>
    %61 = tpu.transpose %60, [1, 0] : vector<6x1xf32> -> vector<1x6xf32>
    %62 = vector.broadcast %55 : vector<6x1xf32> to vector<6x6xf32>
    %63 = vector.broadcast %61 : vector<1x6xf32> to vector<6x6xf32>
    %64 = arith.addf %62, %63 : vector<6x6xf32>
    %cst_27 = arith.constant 0.000000e+00 : f32
    %65 = vector.broadcast %cst_27 : f32 to vector<6x6xf32>
    %66 = arith.cmpf ogt, %64, %65 : vector<6x6xf32>
    %cst_28 = arith.constant 2.000000e-01 : f32
    %67 = vector.broadcast %cst_28 : f32 to vector<6x6xf32>
    %68 = arith.mulf %67, %64 : vector<6x6xf32>
    %69 = arith.select %66, %64, %68 : vector<6x6xi1>, vector<6x6xf32>
    %cst_29 = arith.constant -1.000000e+30 : f32
    %70 = vector.broadcast %cst_29 : f32 to vector<6x6xf32>
    %71 = arith.select %2, %69, %70 : vector<6x6xi1>, vector<6x6xf32>
    %cst_30 = arith.constant dense<0xFF800000> : vector<6xf32>
    %72 = vector.multi_reduction <maximumf>, %71, %cst_30 [1] : vector<6x6xf32> to vector<6xf32>
    %73 = vector.shape_cast %72 : vector<6xf32> to vector<6x1xf32>
    %74 = vector.broadcast %73 : vector<6x1xf32> to vector<6x6xf32>
    %75 = arith.subf %71, %74 : vector<6x6xf32>
    %76 = math.exp %75 : vector<6x6xf32>
    %cst_31 = arith.constant dense<0.000000e+00> : vector<6xf32>
    %77 = vector.multi_reduction <add>, %76, %cst_31 [1] : vector<6x6xf32> to vector<6xf32>
    %78 = vector.shape_cast %77 : vector<6xf32> to vector<6x1xf32>
    %79 = tpu.reciprocal %78 {approx = true} : vector<6x1xf32> -> vector<6x1xf32>
    %80 = vector.broadcast %79 : vector<6x1xf32> to vector<6x6xf32>
    %81 = arith.mulf %76, %80 : vector<6x6xf32>
    %cst_32 = arith.constant dense<0.000000e+00> : vector<6x8xf32>
    %82 = tpu.matmul %81, %49, %cst_32 {dimension_numbers = #tpu.dot_dimension_numbers<[1], [0], [0], [1], [0, 0, 1, 1], [], []>} : vector<6x6xf32>, vector<6x8xf32>, vector<6x8xf32> -> vector<6x8xf32>
    %c0_33 = arith.constant 0 : index
    %c0_34 = arith.constant 0 : index
    %83 = vector.load %arg8[%c0_33, %c0_34] : memref<1x8xf32, #tpu.memory_space<vmem>>, vector<1x8xf32>
    %84 = vector.broadcast %83 : vector<1x8xf32> to vector<6x8xf32>
    %85 = arith.addf %82, %84 : vector<6x8xf32>
    %cst_35 = arith.constant 0.000000e+00 : f32
    %86 = vector.broadcast %cst_35 : f32 to vector<6x8xf32>
    %87 = arith.cmpf ogt, %85, %86 : vector<6x8xf32>
    %88 = math.exp %85 : vector<6x8xf32>
    %cst_36 = arith.constant 1.000000e+00 : f32
    %89 = vector.broadcast %cst_36 : f32 to vector<6x8xf32>
    %90 = arith.subf %88, %89 : vector<6x8xf32>
    %91 = arith.select %87, %85, %90 : vector<6x8xi1>, vector<6x8xf32>
    %c0_37 = arith.constant 0 : index
    %c0_38 = arith.constant 0 : index
    %92 = vector.load %arg9[%c0_37, %c0_38] : memref<8x8xf32, #tpu.memory_space<vmem>>, vector<8x8xf32>
    %cst_39 = arith.constant dense<0.000000e+00> : vector<6x8xf32>
    %93 = tpu.matmul %91, %92, %cst_39 {dimension_numbers = #tpu.dot_dimension_numbers<[1], [0], [0], [1], [0, 0, 1, 1], [], []>} : vector<6x8xf32>, vector<8x8xf32>, vector<6x8xf32> -> vector<6x8xf32>
    %c0_40 = arith.constant 0 : index
    %c0_41 = arith.constant 0 : index
    %94 = vector.load %arg10[%c0_40, %c0_41] : memref<2x8xf32, #tpu.memory_space<vmem>>, vector<2x8xf32>
    %95 = vector.extract_strided_slice %94 {offsets = [0, 0], sizes = [1, 8], strides = [1, 1]} : vector<2x8xf32> to vector<1x8xf32>
    %96 = vector.broadcast %95 : vector<1x8xf32> to vector<6x8xf32>
    %97 = arith.mulf %93, %96 : vector<6x8xf32>
    %cst_42 = arith.constant dense<0.000000e+00> : vector<6xf32>
    %98 = vector.multi_reduction <add>, %97, %cst_42 [1] : vector<6x8xf32> to vector<6xf32>
    %99 = vector.shape_cast %98 : vector<6xf32> to vector<6x1xf32>
    %100 = vector.extract_strided_slice %94 {offsets = [1, 0], sizes = [1, 8], strides = [1, 1]} : vector<2x8xf32> to vector<1x8xf32>
    %101 = vector.broadcast %100 : vector<1x8xf32> to vector<6x8xf32>
    %102 = arith.mulf %93, %101 : vector<6x8xf32>
    %cst_43 = arith.constant dense<0.000000e+00> : vector<6xf32>
    %103 = vector.multi_reduction <add>, %102, %cst_43 [1] : vector<6x8xf32> to vector<6xf32>
    %104 = vector.shape_cast %103 : vector<6xf32> to vector<6x1xf32>
    %105 = tpu.transpose %104, [1, 0] : vector<6x1xf32> -> vector<1x6xf32>
    %106 = vector.broadcast %99 : vector<6x1xf32> to vector<6x6xf32>
    %107 = vector.broadcast %105 : vector<1x6xf32> to vector<6x6xf32>
    %108 = arith.addf %106, %107 : vector<6x6xf32>
    %cst_44 = arith.constant 0.000000e+00 : f32
    %109 = vector.broadcast %cst_44 : f32 to vector<6x6xf32>
    %110 = arith.cmpf ogt, %108, %109 : vector<6x6xf32>
    %cst_45 = arith.constant 2.000000e-01 : f32
    %111 = vector.broadcast %cst_45 : f32 to vector<6x6xf32>
    %112 = arith.mulf %111, %108 : vector<6x6xf32>
    %113 = arith.select %110, %108, %112 : vector<6x6xi1>, vector<6x6xf32>
    %cst_46 = arith.constant -1.000000e+30 : f32
    %114 = vector.broadcast %cst_46 : f32 to vector<6x6xf32>
    %115 = arith.select %2, %113, %114 : vector<6x6xi1>, vector<6x6xf32>
    %cst_47 = arith.constant dense<0xFF800000> : vector<6xf32>
    %116 = vector.multi_reduction <maximumf>, %115, %cst_47 [1] : vector<6x6xf32> to vector<6xf32>
    %117 = vector.shape_cast %116 : vector<6xf32> to vector<6x1xf32>
    %118 = vector.broadcast %117 : vector<6x1xf32> to vector<6x6xf32>
    %119 = arith.subf %115, %118 : vector<6x6xf32>
    %120 = math.exp %119 : vector<6x6xf32>
    %cst_48 = arith.constant dense<0.000000e+00> : vector<6xf32>
    %121 = vector.multi_reduction <add>, %120, %cst_48 [1] : vector<6x6xf32> to vector<6xf32>
    %122 = vector.shape_cast %121 : vector<6xf32> to vector<6x1xf32>
    %123 = tpu.reciprocal %122 {approx = true} : vector<6x1xf32> -> vector<6x1xf32>
    %124 = vector.broadcast %123 : vector<6x1xf32> to vector<6x6xf32>
    %125 = arith.mulf %120, %124 : vector<6x6xf32>
    %cst_49 = arith.constant dense<0.000000e+00> : vector<6x8xf32>
    %126 = tpu.matmul %125, %93, %cst_49 {dimension_numbers = #tpu.dot_dimension_numbers<[1], [0], [0], [1], [0, 0, 1, 1], [], []>} : vector<6x6xf32>, vector<6x8xf32>, vector<6x8xf32> -> vector<6x8xf32>
    %c0_50 = arith.constant 0 : index
    %c0_51 = arith.constant 0 : index
    %127 = vector.load %arg11[%c0_50, %c0_51] : memref<1x8xf32, #tpu.memory_space<vmem>>, vector<1x8xf32>
    %128 = vector.broadcast %127 : vector<1x8xf32> to vector<6x8xf32>
    %129 = arith.addf %126, %128 : vector<6x8xf32>
    %c0_52 = arith.constant 0 : index
    %c0_53 = arith.constant 0 : index
    %130 = vector.load %arg2[%c0_52, %c0_53] : memref<1x6xf32, #tpu.memory_space<vmem>>, vector<1x6xf32>
    %cst_54 = arith.constant dense<0.000000e+00> : vector<1x8xf32>
    %131 = tpu.matmul %130, %129, %cst_54 {dimension_numbers = #tpu.dot_dimension_numbers<[1], [0], [0], [1], [0, 0, 1, 1], [], []>} : vector<1x6xf32>, vector<6x8xf32>, vector<1x8xf32> -> vector<1x8xf32>
    %c0_55 = arith.constant 0 : index
    %c0_56 = arith.constant 0 : index
    %132 = vector.load %arg15[%c0_55, %c0_56] : memref<8x16xf32, #tpu.memory_space<vmem>>, vector<8x16xf32>
    %c0_57 = arith.constant 0 : index
    %c0_58 = arith.constant 0 : index
    %133 = vector.load %arg12[%c0_57, %c0_58] : memref<8x16xf32, #tpu.memory_space<vmem>>, vector<8x16xf32>
    %cst_59 = arith.constant dense<0.000000e+00> : vector<1x16xf32>
    %134 = tpu.matmul %131, %133, %cst_59 {dimension_numbers = #tpu.dot_dimension_numbers<[1], [0], [0], [1], [0, 0, 1, 1], [], []>} : vector<1x8xf32>, vector<8x16xf32>, vector<1x16xf32> -> vector<1x16xf32>
    %135 = vector.extract_strided_slice %132 {offsets = [0, 0], sizes = [1, 16], strides = [1, 1]} : vector<8x16xf32> to vector<1x16xf32>
    %136 = arith.addf %134, %135 : vector<1x16xf32>
    %137 = vector.extract_strided_slice %132 {offsets = [1, 0], sizes = [1, 16], strides = [1, 1]} : vector<8x16xf32> to vector<1x16xf32>
    %138 = vector.extract_strided_slice %132 {offsets = [2, 0], sizes = [1, 16], strides = [1, 1]} : vector<8x16xf32> to vector<1x16xf32>
    %cst_60 = arith.constant dense<0.000000e+00> : vector<1xf32>
    %139 = vector.multi_reduction <add>, %136, %cst_60 [1] : vector<1x16xf32> to vector<1xf32>
    %140 = vector.shape_cast %139 : vector<1xf32> to vector<1x1xf32>
    %cst_61 = arith.constant 1.600000e+01 : f32
    %141 = vector.broadcast %cst_61 : f32 to vector<1x1xf32>
    %142 = arith.divf %140, %141 : vector<1x1xf32>
    %143 = vector.broadcast %142 : vector<1x1xf32> to vector<1x16xf32>
    %144 = arith.subf %136, %143 : vector<1x16xf32>
    %145 = arith.mulf %144, %144 : vector<1x16xf32>
    %cst_62 = arith.constant dense<0.000000e+00> : vector<1xf32>
    %146 = vector.multi_reduction <add>, %145, %cst_62 [1] : vector<1x16xf32> to vector<1xf32>
    %147 = vector.shape_cast %146 : vector<1xf32> to vector<1x1xf32>
    %cst_63 = arith.constant 1.600000e+01 : f32
    %148 = vector.broadcast %cst_63 : f32 to vector<1x1xf32>
    %149 = arith.divf %147, %148 : vector<1x1xf32>
    %150 = vector.broadcast %142 : vector<1x1xf32> to vector<1x16xf32>
    %151 = arith.subf %136, %150 : vector<1x16xf32>
    %cst_64 = arith.constant 9.99999974E-6 : f32
    %152 = vector.broadcast %cst_64 : f32 to vector<1x1xf32>
    %153 = arith.addf %149, %152 : vector<1x1xf32>
    %154 = math.rsqrt %153 : vector<1x1xf32>
    %155 = vector.broadcast %154 : vector<1x1xf32> to vector<1x16xf32>
    %156 = arith.mulf %151, %155 : vector<1x16xf32>
    %157 = arith.mulf %156, %137 : vector<1x16xf32>
    %158 = arith.addf %157, %138 : vector<1x16xf32>
    %159 = math.tanh %158 : vector<1x16xf32>
    %c0_65 = arith.constant 0 : index
    %c0_66 = arith.constant 0 : index
    %160 = vector.load %arg13[%c0_65, %c0_66] : memref<16x16xf32, #tpu.memory_space<vmem>>, vector<16x16xf32>
    %cst_67 = arith.constant dense<0.000000e+00> : vector<1x16xf32>
    %161 = tpu.matmul %159, %160, %cst_67 {dimension_numbers = #tpu.dot_dimension_numbers<[1], [0], [0], [1], [0, 0, 1, 1], [], []>} : vector<1x16xf32>, vector<16x16xf32>, vector<1x16xf32> -> vector<1x16xf32>
    %162 = vector.extract_strided_slice %132 {offsets = [3, 0], sizes = [1, 16], strides = [1, 1]} : vector<8x16xf32> to vector<1x16xf32>
    %163 = arith.addf %161, %162 : vector<1x16xf32>
    %164 = vector.extract_strided_slice %132 {offsets = [4, 0], sizes = [1, 16], strides = [1, 1]} : vector<8x16xf32> to vector<1x16xf32>
    %165 = vector.extract_strided_slice %132 {offsets = [5, 0], sizes = [1, 16], strides = [1, 1]} : vector<8x16xf32> to vector<1x16xf32>
    %cst_68 = arith.constant dense<0.000000e+00> : vector<1xf32>
    %166 = vector.multi_reduction <add>, %163, %cst_68 [1] : vector<1x16xf32> to vector<1xf32>
    %167 = vector.shape_cast %166 : vector<1xf32> to vector<1x1xf32>
    %cst_69 = arith.constant 1.600000e+01 : f32
    %168 = vector.broadcast %cst_69 : f32 to vector<1x1xf32>
    %169 = arith.divf %167, %168 : vector<1x1xf32>
    %170 = vector.broadcast %169 : vector<1x1xf32> to vector<1x16xf32>
    %171 = arith.subf %163, %170 : vector<1x16xf32>
    %172 = arith.mulf %171, %171 : vector<1x16xf32>
    %cst_70 = arith.constant dense<0.000000e+00> : vector<1xf32>
    %173 = vector.multi_reduction <add>, %172, %cst_70 [1] : vector<1x16xf32> to vector<1xf32>
    %174 = vector.shape_cast %173 : vector<1xf32> to vector<1x1xf32>
    %cst_71 = arith.constant 1.600000e+01 : f32
    %175 = vector.broadcast %cst_71 : f32 to vector<1x1xf32>
    %176 = arith.divf %174, %175 : vector<1x1xf32>
    %177 = vector.broadcast %169 : vector<1x1xf32> to vector<1x16xf32>
    %178 = arith.subf %163, %177 : vector<1x16xf32>
    %cst_72 = arith.constant 9.99999974E-6 : f32
    %179 = vector.broadcast %cst_72 : f32 to vector<1x1xf32>
    %180 = arith.addf %176, %179 : vector<1x1xf32>
    %181 = math.rsqrt %180 : vector<1x1xf32>
    %182 = vector.broadcast %181 : vector<1x1xf32> to vector<1x16xf32>
    %183 = arith.mulf %178, %182 : vector<1x16xf32>
    %184 = arith.mulf %183, %164 : vector<1x16xf32>
    %185 = arith.addf %184, %165 : vector<1x16xf32>
    %186 = math.tanh %185 : vector<1x16xf32>
    %c0_73 = arith.constant 0 : index
    %c0_74 = arith.constant 0 : index
    %187 = vector.load %arg14[%c0_73, %c0_74] : memref<16x1xf32, #tpu.memory_space<vmem>>, vector<16x1xf32>
    %cst_75 = arith.constant dense<0.000000e+00> : vector<1x1xf32>
    %188 = tpu.matmul %186, %187, %cst_75 {dimension_numbers = #tpu.dot_dimension_numbers<[1], [0], [0], [1], [0, 0, 1, 1], [], []>} : vector<1x16xf32>, vector<16x1xf32>, vector<1x1xf32> -> vector<1x1xf32>
    %189 = vector.extract_strided_slice %132 {offsets = [6, 0], sizes = [1, 1], strides = [1, 1]} : vector<8x16xf32> to vector<1x1xf32>
    %190 = arith.addf %188, %189 : vector<1x1xf32>
    %c0_76 = arith.constant 0 : index
    %c0_77 = arith.constant 0 : index
    %191 = vector.load %arg25[%c0_76, %c0_77] : memref<1x1xf32, #tpu.memory_space<vmem>>, vector<1x1xf32>
    tpu.vector_store %arg25[%c0_76, %c0_77], %190 {strides = array<i32>} : memref<1x1xf32, #tpu.memory_space<vmem>>, vector<1x1xf32>,
    %c0_78 = arith.constant 0 : index
    %c0_79 = arith.constant 0 : index
    %192 = vector.load %arg21[%c0_78, %c0_79] : memref<3x6xf32, #tpu.memory_space<vmem>>, vector<3x6xf32>
    %cst_80 = arith.constant dense<0.000000e+00> : vector<3x8xf32>
    %193 = tpu.matmul %192, %129, %cst_80 {dimension_numbers = #tpu.dot_dimension_numbers<[1], [0], [0], [1], [0, 0, 1, 1], [], []>} : vector<3x6xf32>, vector<6x8xf32>, vector<3x8xf32> -> vector<3x8xf32>
    %c0_81 = arith.constant 0 : index
    %c0_82 = arith.constant 0 : index
    %194 = vector.load %arg22[%c0_81, %c0_82] : memref<3x6xf32, #tpu.memory_space<vmem>>, vector<3x6xf32>
    %cst_83 = arith.constant dense<0.000000e+00> : vector<3x8xf32>
    %195 = tpu.matmul %194, %129, %cst_83 {dimension_numbers = #tpu.dot_dimension_numbers<[1], [0], [0], [1], [0, 0, 1, 1], [], []>} : vector<3x6xf32>, vector<6x8xf32>, vector<3x8xf32> -> vector<3x8xf32>
    %c0_84 = arith.constant 0 : index
    %c0_85 = arith.constant 0 : index
    %196 = vector.load %arg20[%c0_84, %c0_85] : memref<8x16xf32, #tpu.memory_space<vmem>>, vector<8x16xf32>
    %c0_86 = arith.constant 0 : index
    %c0_87 = arith.constant 0 : index
    %197 = vector.load %arg16[%c0_86, %c0_87] : memref<8x16xf32, #tpu.memory_space<vmem>>, vector<8x16xf32>
    %cst_88 = arith.constant dense<0.000000e+00> : vector<3x16xf32>
    %198 = tpu.matmul %193, %197, %cst_88 {dimension_numbers = #tpu.dot_dimension_numbers<[1], [0], [0], [1], [0, 0, 1, 1], [], []>} : vector<3x8xf32>, vector<8x16xf32>, vector<3x16xf32> -> vector<3x16xf32>
    %c0_89 = arith.constant 0 : index
    %c0_90 = arith.constant 0 : index
    %199 = vector.load %arg17[%c0_89, %c0_90] : memref<8x16xf32, #tpu.memory_space<vmem>>, vector<8x16xf32>
    %cst_91 = arith.constant dense<0.000000e+00> : vector<3x16xf32>
    %200 = tpu.matmul %195, %199, %cst_91 {dimension_numbers = #tpu.dot_dimension_numbers<[1], [0], [0], [1], [0, 0, 1, 1], [], []>} : vector<3x8xf32>, vector<8x16xf32>, vector<3x16xf32> -> vector<3x16xf32>
    %201 = arith.addf %198, %200 : vector<3x16xf32>
    %202 = vector.extract_strided_slice %196 {offsets = [0, 0], sizes = [1, 16], strides = [1, 1]} : vector<8x16xf32> to vector<1x16xf32>
    %203 = vector.broadcast %202 : vector<1x16xf32> to vector<3x16xf32>
    %204 = arith.addf %201, %203 : vector<3x16xf32>
    %205 = vector.extract_strided_slice %196 {offsets = [1, 0], sizes = [1, 16], strides = [1, 1]} : vector<8x16xf32> to vector<1x16xf32>
    %206 = vector.extract_strided_slice %196 {offsets = [2, 0], sizes = [1, 16], strides = [1, 1]} : vector<8x16xf32> to vector<1x16xf32>
    %cst_92 = arith.constant dense<0.000000e+00> : vector<3xf32>
    %207 = vector.multi_reduction <add>, %204, %cst_92 [1] : vector<3x16xf32> to vector<3xf32>
    %208 = vector.shape_cast %207 : vector<3xf32> to vector<3x1xf32>
    %cst_93 = arith.constant 1.600000e+01 : f32
    %209 = vector.broadcast %cst_93 : f32 to vector<3x1xf32>
    %210 = arith.divf %208, %209 : vector<3x1xf32>
    %211 = vector.broadcast %210 : vector<3x1xf32> to vector<3x16xf32>
    %212 = arith.subf %204, %211 : vector<3x16xf32>
    %213 = arith.mulf %212, %212 : vector<3x16xf32>
    %cst_94 = arith.constant dense<0.000000e+00> : vector<3xf32>
    %214 = vector.multi_reduction <add>, %213, %cst_94 [1] : vector<3x16xf32> to vector<3xf32>
    %215 = vector.shape_cast %214 : vector<3xf32> to vector<3x1xf32>
    %cst_95 = arith.constant 1.600000e+01 : f32
    %216 = vector.broadcast %cst_95 : f32 to vector<3x1xf32>
    %217 = arith.divf %215, %216 : vector<3x1xf32>
    %218 = vector.broadcast %210 : vector<3x1xf32> to vector<3x16xf32>
    %219 = arith.subf %204, %218 : vector<3x16xf32>
    %cst_96 = arith.constant 9.99999974E-6 : f32
    %220 = vector.broadcast %cst_96 : f32 to vector<3x1xf32>
    %221 = arith.addf %217, %220 : vector<3x1xf32>
    %222 = math.rsqrt %221 : vector<3x1xf32>
    %223 = vector.broadcast %222 : vector<3x1xf32> to vector<3x16xf32>
    %224 = arith.mulf %219, %223 : vector<3x16xf32>
    %225 = vector.broadcast %205 : vector<1x16xf32> to vector<3x16xf32>
    %226 = arith.mulf %224, %225 : vector<3x16xf32>
    %227 = vector.broadcast %206 : vector<1x16xf32> to vector<3x16xf32>
    %228 = arith.addf %226, %227 : vector<3x16xf32>
    %229 = math.tanh %228 : vector<3x16xf32>
    %c0_97 = arith.constant 0 : index
    %c0_98 = arith.constant 0 : index
    %230 = vector.load %arg18[%c0_97, %c0_98] : memref<16x16xf32, #tpu.memory_space<vmem>>, vector<16x16xf32>
    %cst_99 = arith.constant dense<0.000000e+00> : vector<3x16xf32>
    %231 = tpu.matmul %229, %230, %cst_99 {dimension_numbers = #tpu.dot_dimension_numbers<[1], [0], [0], [1], [0, 0, 1, 1], [], []>} : vector<3x16xf32>, vector<16x16xf32>, vector<3x16xf32> -> vector<3x16xf32>
    %232 = vector.extract_strided_slice %196 {offsets = [3, 0], sizes = [1, 16], strides = [1, 1]} : vector<8x16xf32> to vector<1x16xf32>
    %233 = vector.broadcast %232 : vector<1x16xf32> to vector<3x16xf32>
    %234 = arith.addf %231, %233 : vector<3x16xf32>
    %235 = vector.extract_strided_slice %196 {offsets = [4, 0], sizes = [1, 16], strides = [1, 1]} : vector<8x16xf32> to vector<1x16xf32>
    %236 = vector.extract_strided_slice %196 {offsets = [5, 0], sizes = [1, 16], strides = [1, 1]} : vector<8x16xf32> to vector<1x16xf32>
    %cst_100 = arith.constant dense<0.000000e+00> : vector<3xf32>
    %237 = vector.multi_reduction <add>, %234, %cst_100 [1] : vector<3x16xf32> to vector<3xf32>
    %238 = vector.shape_cast %237 : vector<3xf32> to vector<3x1xf32>
    %cst_101 = arith.constant 1.600000e+01 : f32
    %239 = vector.broadcast %cst_101 : f32 to vector<3x1xf32>
    %240 = arith.divf %238, %239 : vector<3x1xf32>
    %241 = vector.broadcast %240 : vector<3x1xf32> to vector<3x16xf32>
    %242 = arith.subf %234, %241 : vector<3x16xf32>
    %243 = arith.mulf %242, %242 : vector<3x16xf32>
    %cst_102 = arith.constant dense<0.000000e+00> : vector<3xf32>
    %244 = vector.multi_reduction <add>, %243, %cst_102 [1] : vector<3x16xf32> to vector<3xf32>
    %245 = vector.shape_cast %244 : vector<3xf32> to vector<3x1xf32>
    %cst_103 = arith.constant 1.600000e+01 : f32
    %246 = vector.broadcast %cst_103 : f32 to vector<3x1xf32>
    %247 = arith.divf %245, %246 : vector<3x1xf32>
    %248 = vector.broadcast %240 : vector<3x1xf32> to vector<3x16xf32>
    %249 = arith.subf %234, %248 : vector<3x16xf32>
    %cst_104 = arith.constant 9.99999974E-6 : f32
    %250 = vector.broadcast %cst_104 : f32 to vector<3x1xf32>
    %251 = arith.addf %247, %250 : vector<3x1xf32>
    %252 = math.rsqrt %251 : vector<3x1xf32>
    %253 = vector.broadcast %252 : vector<3x1xf32> to vector<3x16xf32>
    %254 = arith.mulf %249, %253 : vector<3x16xf32>
    %255 = vector.broadcast %235 : vector<1x16xf32> to vector<3x16xf32>
    %256 = arith.mulf %254, %255 : vector<3x16xf32>
    %257 = vector.broadcast %236 : vector<1x16xf32> to vector<3x16xf32>
    %258 = arith.addf %256, %257 : vector<3x16xf32>
    %259 = math.tanh %258 : vector<3x16xf32>
    %c0_105 = arith.constant 0 : index
    %c0_106 = arith.constant 0 : index
    %260 = vector.load %arg19[%c0_105, %c0_106] : memref<16x1xf32, #tpu.memory_space<vmem>>, vector<16x1xf32>
    %cst_107 = arith.constant dense<0.000000e+00> : vector<3x1xf32>
    %261 = tpu.matmul %259, %260, %cst_107 {dimension_numbers = #tpu.dot_dimension_numbers<[1], [0], [0], [1], [0, 0, 1, 1], [], []>} : vector<3x16xf32>, vector<16x1xf32>, vector<3x1xf32> -> vector<3x1xf32>
    %262 = vector.extract_strided_slice %196 {offsets = [6, 0], sizes = [1, 1], strides = [1, 1]} : vector<8x16xf32> to vector<1x1xf32>
    %263 = vector.broadcast %262 : vector<1x1xf32> to vector<3x1xf32>
    %264 = arith.addf %261, %263 : vector<3x1xf32>
    %cst_108 = arith.constant -1.000000e+01 : f32
    %cst_109 = arith.constant 1.000000e+01 : f32
    %265 = vector.broadcast %cst_108 : f32 to vector<3x1xf32>
    %266 = arith.maximumf %265, %264 : vector<3x1xf32>
    %267 = vector.broadcast %cst_109 : f32 to vector<3x1xf32>
    %268 = arith.minimumf %267, %266 : vector<3x1xf32>
    %269 = tpu.transpose %268, [1, 0] : vector<3x1xf32> -> vector<1x3xf32>
    %c0_110 = arith.constant 0 : index
    %c0_111 = arith.constant 0 : index
    %270 = vector.load %arg23[%c0_110, %c0_111] : memref<1x3xf32, #tpu.memory_space<vmem>>, vector<1x3xf32>
    %cst_112 = arith.constant 0.000000e+00 : f32
    %271 = vector.broadcast %cst_112 : f32 to vector<1x3xf32>
    %272 = arith.cmpf ogt, %270, %271 : vector<1x3xf32>
    %cst_113 = arith.constant -1.000000e+30 : f32
    %273 = vector.broadcast %cst_113 : f32 to vector<1x3xf32>
    %274 = arith.select %272, %269, %273 : vector<1x3xi1>, vector<1x3xf32>
    %cst_114 = arith.constant dense<0xFF800000> : vector<1xf32>
    %275 = vector.multi_reduction <maximumf>, %274, %cst_114 [1] : vector<1x3xf32> to vector<1xf32>
    %276 = vector.shape_cast %275 : vector<1xf32> to vector<1x1xf32>
    %277 = vector.broadcast %276 : vector<1x1xf32> to vector<1x3xf32>
    %278 = arith.subf %274, %277 : vector<1x3xf32>
    %279 = math.exp %278 : vector<1x3xf32>
    %cst_115 = arith.constant dense<0.000000e+00> : vector<1xf32>
    %280 = vector.multi_reduction <add>, %279, %cst_115 [1] : vector<1x3xf32> to vector<1xf32>
    %281 = vector.shape_cast %280 : vector<1xf32> to vector<1x1xf32>
    %282 = vector.broadcast %281 : vector<1x1xf32> to vector<1x3xf32>
    %283 = arith.divf %279, %282 : vector<1x3xf32>
    %cst_116 = arith.constant 5.000000e-01 : f32
    %284 = vector.broadcast %cst_116 : f32 to vector<1x3xf32>
    %285 = arith.cmpf ogt, %270, %284 : vector<1x3xf32>
    %286 = arith.extui %285 : vector<1x3xi1> to vector<1x3xi32>
    %cst_117 = arith.constant dense<0> : vector<1xi32>
    %287 = vector.multi_reduction <add>, %286, %cst_117 [1] : vector<1x3xi32> to vector<1xi32>
    %288 = vector.shape_cast %287 : vector<1xi32> to vector<1x1xi32>
    %c1_i32 = arith.constant 1 : i32
    %289 = vector.broadcast %c1_i32 : i32 to vector<1x1xi32>
    %290 = arith.cmpi eq, %288, %289 : vector<1x1xi32>
    %291 = vector.shape_cast %290 : vector<1x1xi1> to vector<1x1xi1>
    %292 = vector.broadcast %291 : vector<1x1xi1> to vector<1x3xi1>
    %293 = arith.select %292, %270, %283 : vector<1x3xi1>, vector<1x3xf32>
    %c0_118 = arith.constant 0 : index
    %c0_119 = arith.constant 0 : index
    %294 = vector.load %arg24[%c0_118, %c0_119] : memref<1x3xf32, #tpu.memory_space<vmem>>, vector<1x3xf32>
    tpu.vector_store %arg24[%c0_118, %c0_119], %293 {strides = array<i32>} : memref<1x3xf32, #tpu.memory_space<vmem>>, vector<1x3xf32>,
    return
  }
}

</mosaic_0001>

<bundles_post_ra>
// kernel: actor_critic_forward.1
= control target key start
LH: loop header
LB: loop body
LE: loop exit
PB: predicated region body
PF: predicated region fallthrough
CT: control target
= control target key end

     0   :  { %s2356_s0 = inlined_call_operand.vmem [shape: f32[6,4], index: 0, kind: input, shape index: {}]   ;;  %s2357_s1 = inlined_call_operand.vmem [shape: f32[6,6], index: 1, kind: input, shape index: {}]   ;;  %s2358_s2 = inlined_call_operand.vmem [shape: f32[1,6], index: 2, kind: input, shape index: {}]   ;;  %s2359_s3 = inlined_call_operand.vmem [shape: f32[4,8], index: 3, kind: input, shape index: {}]   ;;  %s2360_s4 = inlined_call_operand.vmem [shape: f32[2,8], index: 4, kind: input, shape index: {}]   ;;  %s2361_s5 = inlined_call_operand.vmem [shape: f32[1,8], index: 5, kind: input, shape index: {}]   ;;  %s2362_s6 = inlined_call_operand.vmem [shape: f32[8,8], index: 6, kind: input, shape index: {}]   ;;  %s2363_s7 = inlined_call_operand.vmem [shape: f32[2,8], index: 7, kind: input, shape index: {}]   ;;  %s2364_s8 = inlined_call_operand.vmem [shape: f32[1,8], index: 8, kind: input, shape index: {}]   ;;  %s2365_s9 = inlined_call_operand.vmem [shape: f32[8,8], index: 9, kind: input, shape index: {}]   ;;  %s2366_s10 = inlined_call_operand.vmem [shape: f32[2,8], index: 10, kind: input, shape index: {}]   ;;  %s2367_s11 = inlined_call_operand.vmem [shape: f32[1,8], index: 11, kind: input, shape index: {}]   ;;  %s2368_s12 = inlined_call_operand.vmem [shape: f32[8,16], index: 12, kind: input, shape index: {}]   ;;  %s2369_s13 = inlined_call_operand.vmem [shape: f32[16,16], index: 13, kind: input, shape index: {}]   ;;  %s2370_s14 = inlined_call_operand.vmem [shape: f32[16,1], index: 14, kind: input, shape index: {}]   ;;  %s2371_s15 = inlined_call_operand.vmem [shape: f32[8,16], index: 15, kind: input, shape index: {}]   ;;  %s2372_s16 = inlined_call_operand.vmem [shape: f32[8,16], index: 16, kind: input, shape index: {}]   ;;  %s2373_s17 = inlined_call_operand.vmem [shape: f32[8,16], index: 17, kind: input, shape index: {}]   ;;  %s2374_s18 = inlined_call_operand.vmem [shape: f32[16,16], index: 18, kind: input, shape index: {}]   ;;  %s2375_s19 = inlined_call_operand.vmem [shape: f32[16,1], index: 19, kind: input, shape index: {}]   ;;  %s2376_s20 = inlined_call_operand.vmem [shape: f32[8,16], index: 20, kind: input, shape index: {}]   ;;  %s2377_s21 = inlined_call_operand.vmem [shape: f32[3,6], index: 21, kind: input, shape index: {}]   ;;  %s2378_s22 = inlined_call_operand.vmem [shape: f32[3,6], index: 22, kind: input, shape index: {}]   ;;  %s2379_s23 = inlined_call_operand.vmem [shape: f32[1,3], index: 23, kind: input, shape index: {}]   ;;  %s2380_s24 = inlined_call_operand.hbm [shape: f32[1,3], index: 24, kind: output, shape index: {0}]   ;;  %s2381_s25 = inlined_call_operand.hbm [shape: f32[1,1], index: 25, kind: output, shape index: {1}]  }
   0x1   :  { %2382 = sst [smem:[#allocation8_spill]] %s2356_s0 }
   0x2   :  { %2383 = sst [smem:[#allocation9_spill]] %s2357_s1 }
   0x3   :  { %2384 = sst [smem:[#allocation10_spill]] %s2358_s2 }
   0x4   :  { %2385 = sst [smem:[#allocation11_spill]] %s2359_s3 }
   0x5   :  { %2386 = sst [smem:[#allocation12_spill]] %s2360_s4 }
   0x6   :  { %2387 = sst [smem:[#allocation13_spill]] %s2361_s5 }
   0x7   :  { %2388 = sst [smem:[#allocation14_spill]] %s2362_s6 }
   0x8   :  { %2389 = sst [smem:[#allocation15_spill]] %s2363_s7 }
   0x9   :  { %2390 = sst [smem:[#allocation16_spill]] %s2364_s8 }
   0xa   :  { %2391 = sst [smem:[#allocation17_spill]] %s2365_s9 }
   0xb   :  { %31 = vsyncpa [#allocation3], 0  ;;  %s2392_s6 = sld [smem:[#allocation11_spill]]  ;;  %vm89_vm0 = vcmask 1043456   ;;  %vm85_vm1 = vcmask 31744   ;;  %v1978_v1 = vmov 0.0  }
   0xc   :  { %1805 = vmatprep.subr.mxu0 %v1978_v1  ;;  %vm1979_vm2 = vmmov 0   ;;  %s2393_s3 = sld [smem:[#allocation8_spill]] }
   0xd   :  { %1807 = vmatprep.mubr.msk.f32.mxu0 %vm1979_vm2, %v1978_v1 }
  0x11   :  { %v84_v0 = vld [vmem:[%s2392_s6] sm:$0xf] }
  0x12   :  { %v83_v2 = vld [vmem:[%s2393_s3] sm:$0x3f] }
  0x13   :  { %32 = vsyncpa [#allocation5], 0  ;;  %1806 = vmatpush3.msk.msra.mxu0 %vm89_vm0, %v84_v0  ;;  %1810 = vmatprep.subr.mxu1 %v1978_v1  ;;  %v164_v3 = vlaneseq  ;;  %s2394_s8 = sld [smem:[#allocation12_spill]]  ;;  %vm245_vm3 = vcmask 1045504   ;;  %vm169_vm4 = vcmask 62464   ;;  %vm222_vm7 = vcmask 46080  }
  0x14   :  { %1808 = vmatmul.mubr.msk.f32.vlgmr.msra.gmra.mxu0 %vm85_vm1, %v83_v2  ;;  %1812 = vmatprep.mubr.msk.f32.mxu1 %vm1979_vm2, %v1978_v1  ;;  %s2395_s28 = sld [smem:[#allocation9_spill]]  ;;  %vm241_vm8 = vcmask 48128   ;;  %vm325_vm9 = vcmask 64512   ;;  %vm934_vm14 = vcmask 122880   ;;  %vm961_vm15 = vcmask 130048  }
  0x15   :  { %1815 = vmatprep.subr.mxu0 %v1978_v1  ;;  %1817 = vmatprep.mubr.msk.f32.mxu0 %vm1979_vm2, %v1978_v1  ;;  %v2128_v4 = vshrl.u32 %v164_v3, 7  ;;  %s2396_s0 = sld [smem:[#allocation14_spill]]  ;;  %vm1132_vm0 = vcmask 0   ;;  %vm1436_vm1 = vcmask 124928  }
  0x16   :  { %s2397_s6 = sld [smem:[#allocation13_spill]] }
  0x17   :  { %v2131_v5 = vsub.s32 1, %v2128_v4  ;;  %v2137_v7 = vsub.s32 0, %v2128_v4  ;;  %s2398_s3 = sld [smem:[#allocation15_spill]] }
  0x19   :  { %v163_v6 = vld [vmem:[%s2394_s8] sm:$0x3]  ;;  %s2399_s8 = sld [smem:[#allocation17_spill]] }
  0x1a   :  { %v176_v8 = vrot.slane %v163_v6, %v2131_v5  ;;  %v167_v9 = vrot.slane %v163_v6, %v2137_v7  ;;  %v2149_v20 = vld [vmem:[%s2395_s28] sm:$0x3f]  ;;  %s2400_s28 = sld [smem:[#allocation16_spill]] }
  0x1b   :  { %vm82_vm5 = vcmp.gt.f32.partialorder %v2149_v20, 0.0  ;;  %v324_v34 = vld [vmem:[%s2396_s0] sm:$0xff] }
  0x1c   :  { %1816 = vmatpush3.msra.mxu0 %v324_v34  ;;  %v1742_v35 = vld [vmem:[%s2397_s6] ss:$0 sm:$0xff]  ;;  %s2401_s6 = sld [smem:[#allocation10_spill]] }
  0x1d   :  { %1825 = vmatprep.subr.mxu0 %v1978_v1  ;;  %v399_v43 = vld [vmem:[%s2398_s3] sm:$0x3] }
  0x1e   :  { %v411_v44 = vrot.slane %v399_v43, %v2131_v5  ;;  %v403_v45 = vrot.slane %v399_v43, %v2137_v7  ;;  %v1752_v20 = vld [vmem:[%s2367_s11] ss:$0 sm:$0xff] }
  0xd4   :  { %v159_v10 = vpop.f32.mrf.mxu0 }
  0xd5   :  { %1811 = vmatpush3.msk.msra.mxu1 %vm245_vm3, %v159_v10  ;;  %v177_v11 = vmul.f32 %v176_v8, %v159_v10  ;;  %v168_v14 = vmul.f32 %v167_v9, %v159_v10  ;;  %v556_v9 = vld [vmem:[%s2399_s8] sm:$0xff] }
  0xd6   :  { %v1809_v12 = vpop.f32.mrf.mxu0  ;;  %1820 = vmatprep.subr.mxu1 %v1978_v1  ;;  %v1747_v10 = vld [vmem:[%s2400_s28] ss:$0 sm:$0xff] }
  0xd7   :  { %v178_v13 = vsel %vm169_vm4, %v177_v11, 0.0  ;;  %v170_v15 = vsel %vm169_vm4, %v168_v14, 0.0 }
  0xd8   :  { %179 = vadd.xlane.f32.xlu0 %v178_v13 }
  0xdc   :  { %171 = vadd.xlane.f32.xlu0 %v170_v15 }
 0x161   :  { %v180_v16 = vpop.xlane.xlu0 %179 }
 0x162   :  { %181 = vxpose.xlu1.b32.start.end [1/1] (short) (narrow) %v180_v16, 8 }
 0x165   :  { %v172_v19 = vpop.xlane.xlu0 %171 }
 0x1de   :  { %v197_v17 = vpop.trf.xlu1 }
 0x1df   :  { %v216_v18 = vrot.slane %v197_v17, %v2137_v7 }
 0x1e1   :  { %v217_v21 = vadd.f32 %v216_v18, %v172_v19  ;;  %v630_v18 = vld [vmem:[%s2366_s10] sm:$0x3] }
 0x1e2   :  { %v642_v19 = vrot.slane %v630_v18, %v2131_v5 }
 0x1e3   :  { %vm218_vm6 = vcmp.gt.f32.partialorder %v217_v21, 0.0  ;;  %v219_v22 = vmul.f32 0.2, %v217_v21 }
 0x1e5   :  { %v220_v23 = vsel %vm218_vm6, %v217_v21, %v219_v22  ;;  %v634_v21 = vrot.slane %v630_v18, %v2137_v7 }
 0x1e6   :  { %v221_v24 = vsel %vm82_vm5, %v220_v23, -1e+30 }
 0x1e7   :  { %v223_v25 = vsel %vm222_vm7, %v221_v24, -inf }
 0x1e8   :  { %224 = vmax.xlane.f32.xlu1 %v223_v25 }
 0x271   :  { %v225_v26 = vpop.xlane.xlu1 %224 }
 0x272   :  { %v226_v27 = vsub.f32 %v221_v24, %v225_v26 }
 0x274   :  { %v227_v28 = vmul.f32 1.442695, %v226_v27 }
 0x276   :  { %1898 = vpow2.f32 %v227_v28 }
 0x283   :  { %v1899_v29 = vpop.eup %1898 }
 0x284   :  { %v229_v30 = vsel %vm222_vm7, %v1899_v29, 0.0 }
 0x285   :  { %230 = vadd.xlane.f32.xlu0 %v229_v30 }
 0x30e   :  { %v231_v31 = vpop.xlane.xlu0 %230 }
 0x30f   :  { %1900 = vrcp.f32 %v231_v31 }
 0x31c   :  { %v1901_v32 = vpop.eup %1900 }
 0x31d   :  { %v233_v33 = vmul.f32 %v1901_v32, %v1899_v29 }
 0x31f   :  { %1813 = vmatmul.mubr.msk.f32.vlgmr.msra.gmra.mxu1 %vm241_vm8, %v233_v33 }
 0x320   :  { %1822 = vmatprep.mubr.msk.f32.mxu1 %vm1979_vm2, %v1978_v1 }
 0x3df   :  { %v315_v36 = vpop.f32.mrf.mxu1 }
 0x3e0   :  { %v316_v37 = vadd.f32 %v1742_v35, %v315_v36 }
 0x3e1   :  { %v1814_v38 = vpop.f32.mrf.mxu1 }
 0x3e2   :  { %v320_v39 = vmul.f32 1.442695, %v316_v37  ;;  %vm319_vm10 = vcmp.gt.f32.partialorder %v316_v37, 0.0 }
 0x3e4   :  { %1902 = vpow2.f32 %v320_v39 }
 0x3f1   :  { %v1903_v40 = vpop.eup %1902 }
 0x3f2   :  { %v1745_v41 = vadd.f32 -1.0, %v1903_v40 }
 0x3f4   :  { %v323_v42 = vsel %vm319_vm10, %v316_v37, %v1745_v41 }
 0x3f5   :  { %1818 = vmatmul.mubr.msk.f32.vlgmr.msra.gmra.mxu0 %vm325_vm9, %v323_v42 }
 0x3f6   :  { %1827 = vmatprep.mubr.msk.f32.mxu0 %vm1979_vm2, %v1978_v1  ;;  %1826 = vmatpush3.msra.mxu0 %v556_v9 }
 0x3f7   :  { %1835 = vmatprep.subr.mxu0 %v1978_v1 }
 0x4b5   :  { %v395_v46 = vpop.f32.mrf.mxu0 }
 0x4b6   :  { %1821 = vmatpush3.msk.msra.mxu1 %vm245_vm3, %v395_v46  ;;  %v412_v47 = vmul.f32 %v411_v44, %v395_v46  ;;  %v404_v50 = vmul.f32 %v403_v45, %v395_v46 }
 0x4b7   :  { %v1819_v48 = vpop.f32.mrf.mxu0  ;;  %1830 = vmatprep.subr.mxu1 %v1978_v1 }
 0x4b8   :  { %v413_v49 = vsel %vm169_vm4, %v412_v47, 0.0  ;;  %v405_v51 = vsel %vm169_vm4, %v404_v50, 0.0  ;;  %v782_v47 = vld [vmem:[%s2401_s6] sm:$0x1] }
 0x4b9   :  { %414 = vadd.xlane.f32.xlu0 %v413_v49  ;;  %v860_v49 = vld [vmem:[%s2368_s12] sm:$0xff] }
 0x4bd   :  { %406 = vadd.xlane.f32.xlu0 %v405_v51 }
 0x542   :  { %v415_v52 = vpop.xlane.xlu0 %414 }
 0x543   :  { %416 = vxpose.xlu0.b32.start.end [1/1] (short) (narrow) %v415_v52, 8  ;;  %v2237_v52 = vld [vmem:[%s2371_s15] sm:$0xff] }
 0x544   :  { %v953_v9 = vrot.slane %v2237_v52, 2 }
 0x546   :  { %v407_v53 = vpop.xlane.xlu0 %406 }
 0x5bf   :  { %v432_v54 = vpop.trf.xlu0 }
 0x5c0   :  { %v451_v55 = vrot.slane %v432_v54, %v2137_v7 }
 0x5c2   :  { %v452_v56 = vadd.f32 %v451_v55, %v407_v53 }
 0x5c4   :  { %vm453_vm11 = vcmp.gt.f32.partialorder %v452_v56, 0.0  ;;  %v454_v57 = vmul.f32 0.2, %v452_v56 }
 0x5c6   :  { %v455_v58 = vsel %vm453_vm11, %v452_v56, %v454_v57 }
 0x5c7   :  { %v456_v59 = vsel %vm82_vm5, %v455_v58, -1e+30 }
 0x5c8   :  { %v457_v60 = vsel %vm222_vm7, %v456_v59, -inf }
 0x5c9   :  { %458 = vmax.xlane.f32.xlu1 %v457_v60 }
 0x652   :  { %v459_v61 = vpop.xlane.xlu1 %458 }
 0x653   :  { %v460_v62 = vsub.f32 %v456_v59, %v459_v61 }
 0x655   :  { %v461_v63 = vmul.f32 1.442695, %v460_v62  ;;  %v958_v62 = vld [vmem:[%s2369_s13 + $0x8] sm:$0xff] }
 0x657   :  { %1904 = vpow2.f32 %v461_v63  ;;  %v957_v63 = vld [vmem:[%s2369_s13] sm:$0xff] }
 0x664   :  { %v1905_v0 = vpop.eup %1904 }
 0x665   :  { %v463_v2 = vsel %vm222_vm7, %v1905_v0, 0.0 }
 0x666   :  { %464 = vadd.xlane.f32.xlu1 %v463_v2 }
 0x6ef   :  { %v465_v3 = vpop.xlane.xlu1 %464 }
 0x6f0   :  { %1906 = vrcp.f32 %v465_v3 }
 0x6fd   :  { %v1907_v6 = vpop.eup %1906 }
 0x6fe   :  { %v467_v8 = vmul.f32 %v1907_v6, %v1905_v0  ;;  %v950_v6 = vrot.slane %v2237_v52, 1 }
 0x700   :  { %1823 = vmatmul.mubr.msk.f32.vlgmr.msra.gmra.mxu1 %vm241_vm8, %v467_v8 }
 0x701   :  { %1832 = vmatprep.mubr.msk.f32.mxu1 %vm1979_vm2, %v1978_v1 }
 0x7c0   :  { %v547_v11 = vpop.f32.mrf.mxu1 }
 0x7c1   :  { %v548_v12 = vadd.f32 %v1747_v10, %v547_v11 }
 0x7c2   :  { %v1824_v13 = vpop.f32.mrf.mxu1 }
 0x7c3   :  { %v552_v14 = vmul.f32 1.442695, %v548_v12  ;;  %vm551_vm12 = vcmp.gt.f32.partialorder %v548_v12, 0.0 }
 0x7c5   :  { %1908 = vpow2.f32 %v552_v14  ;;  %v959_v14 = vrot.slane %v2237_v52, 3 }
 0x7d2   :  { %v1909_v15 = vpop.eup %1908 }
 0x7d3   :  { %v1750_v16 = vadd.f32 -1.0, %v1909_v15 }
 0x7d5   :  { %v555_v17 = vsel %vm551_vm12, %v548_v12, %v1750_v16 }
 0x7d6   :  { %1828 = vmatmul.mubr.msk.f32.vlgmr.msra.gmra.mxu0 %vm325_vm9, %v555_v17 }
 0x7d7   :  { %1837 = vmatprep.mubr.msk.f32.mxu0 %vm1979_vm2, %v1978_v1 }
 0x896   :  { %v626_v22 = vpop.f32.mrf.mxu0 }
 0x897   :  { %1831 = vmatpush3.msk.msra.mxu1 %vm245_vm3, %v626_v22  ;;  %v643_v23 = vmul.f32 %v642_v19, %v626_v22  ;;  %v635_v26 = vmul.f32 %v634_v21, %v626_v22 }
 0x898   :  { %v1829_v24 = vpop.f32.mrf.mxu0  ;;  %1840 = vmatprep.subr.mxu1 %v1978_v1 }
 0x899   :  { %v644_v25 = vsel %vm169_vm4, %v643_v23, 0.0  ;;  %v636_v27 = vsel %vm169_vm4, %v635_v26, 0.0  ;;  %v1055_v26 = vld [vmem:[%s2370_s14] sm:$0xff] }
 0x89a   :  { %645 = vadd.xlane.f32.xlu1 %v644_v25  ;;  %v1056_v25 = vld [vmem:[%s2370_s14 + $0x8] sm:$0xff] }
 0x89e   :  { %637 = vadd.xlane.f32.xlu1 %v636_v27  ;;  %v1134_v27 = vld [vmem:[%s2377_s21] sm:$0x7] }
 0x923   :  { %v646_v28 = vpop.xlane.xlu1 %645 }
 0x924   :  { %647 = vxpose.xlu1.b32.start.end [1/1] (short) (narrow) %v646_v28, 8 }
 0x927   :  { %v638_v29 = vpop.xlane.xlu1 %637 }
 0x9a0   :  { %v663_v30 = vpop.trf.xlu1 }
 0x9a1   :  { %v682_v31 = vrot.slane %v663_v30, %v2137_v7 }
 0x9a3   :  { %v683_v32 = vadd.f32 %v682_v31, %v638_v29  ;;  %v1048_v31 = vrot.slane %v2237_v52, 4 }
 0x9a5   :  { %vm684_vm13 = vcmp.gt.f32.partialorder %v683_v32, 0.0  ;;  %v685_v33 = vmul.f32 0.2, %v683_v32 }
 0x9a7   :  { %v686_v34 = vsel %vm684_vm13, %v683_v32, %v685_v33  ;;  %v1051_v33 = vrot.slane %v2237_v52, 5 }
 0x9a8   :  { %v687_v35 = vsel %vm82_vm5, %v686_v34, -1e+30 }
 0x9a9   :  { %v688_v36 = vsel %vm222_vm7, %v687_v35, -inf }
 0x9aa   :  { %689 = vmax.xlane.f32.xlu0 %v688_v36 }
 0xa33   :  { %v690_v37 = vpop.xlane.xlu0 %689 }
 0xa34   :  { %v691_v38 = vsub.f32 %v687_v35, %v690_v37 }
 0xa36   :  { %v692_v39 = vmul.f32 1.442695, %v691_v38  ;;  %v1208_v38 = vld [vmem:[%s2378_s22] sm:$0x7] }
 0xa38   :  { %1910 = vpow2.f32 %v692_v39 }
 0xa45   :  { %v1911_v40 = vpop.eup %1910 }
 0xa46   :  { %v694_v41 = vsel %vm222_vm7, %v1911_v40, 0.0 }
 0xa47   :  { %695 = vadd.xlane.f32.xlu0 %v694_v41  ;;  %v1284_v41 = vld [vmem:[%s2373_s17] sm:$0xff] }
 0xad0   :  { %v696_v42 = vpop.xlane.xlu0 %695 }
 0xad1   :  { %1912 = vrcp.f32 %v696_v42 }
 0xade   :  { %v1913_v43 = vpop.eup %1912 }
 0xadf   :  { %v698_v44 = vmul.f32 %v1913_v43, %v1911_v40  ;;  %v1283_v40 = vld [vmem:[%s2372_s16] sm:$0xff]  ;;  %v1057_v43 = vrot.slane %v2237_v52, 6 }
 0xae1   :  { %1833 = vmatmul.mubr.msk.f32.vlgmr.msra.gmra.mxu1 %vm241_vm8, %v698_v44 }
 0xae2   :  { %1842 = vmatprep.mubr.msk.f32.mxu1 %vm1979_vm2, %v1978_v1  ;;  %1841 = vmatpush3.msra.mxu1 %v860_v49 }
 0xae3   :  { %1852 = vmatprep.subr.mxu1 %v1978_v1 }
 0xba1   :  { %v778_v45 = vpop.f32.mrf.mxu1 }
 0xba2   :  { %v2216_v46 = vadd.f32 %v1752_v20, %v778_v45 }
 0xba3   :  { %v1834_v48 = vpop.f32.mrf.mxu1 }
 0xba4   :  { %1836 = vmatpush3.msk.msra.mxu0 %vm245_vm3, %v2216_v46 }
 0xba5   :  { %1838 = vmatmul.mubr.msk.f32.vlgmr.msra.gmra.mxu0 %vm241_vm8, %v782_v47  ;;  %1845 = vmatprep.subr.mxu0 %v1978_v1 }
 0xba6   :  { %1849 = vmatprep.mubr.msk.f32.mxu0 %vm1979_vm2, %v1978_v1  ;;  %1846 = vmatpush3.msra.mxu0 %v958_v62  ;;  %v1462_v62 = vld [vmem:[%s2374_s18 + $0x8] sm:$0xff] }
 0xba7   :  { %1847 = vmatprep.subr.mxu0 %v1978_v1 }
 0xba8   :  { %1848 = vmatpush3.msra.mxu0 %v957_v63 }
 0xba9   :  { %1859 = vmatprep.subr.mxu0 %v1978_v1 }
 0xc65   :  { %v855_v50 = vpop.f32.mrf.mxu0 }
 0xc66   :  { %1843 = vmatmul.mubr.msk.f32.vlgmr.msra.gmra.mxu1 %vm325_vm9, %v855_v50  ;;  %v2307_v50 = vld [vmem:[%s2376_s20] sm:$0xff] }
 0xc67   :  { %v1839_v51 = vpop.f32.mrf.mxu0  ;;  %1856 = vmatprep.mubr.msk.f32.mxu1 %vm1979_vm2, %v1978_v1  ;;  %1853 = vmatpush3.msra.mxu1 %v1056_v25  ;;  %v1565_v25 = vld [vmem:[%s2375_s19 + $0x8] sm:$0xff] }
 0xc68   :  { %1854 = vmatprep.subr.mxu1 %v1978_v1  ;;  %v1434_v51 = vrot.slane %v2307_v50, %v2137_v7  ;;  %v1461_v7 = vld [vmem:[%s2374_s18] sm:$0xff] }
 0xc69   :  { %1855 = vmatpush3.msra.mxu1 %v1055_v26  ;;  %v1564_v26 = vld [vmem:[%s2375_s19] sm:$0xff] }
 0xc6a   :  { %1864 = vmatprep.subr.mxu1 %v1978_v1 }
 0xd26   :  { %v930_v53 = vpop.f32.mrf.mxu1 }
 0xd27   :  { %v931_v54 = vadd.f32 %v930_v53, %v2237_v52 }
 0xd28   :  { %v1844_v55 = vpop.f32.mrf.mxu1 }
 0xd29   :  { %v935_v56 = vsel %vm934_vm14, %v931_v54, 0.0 }
 0xd2a   :  { %936 = vadd.xlane.f32.xlu1 %v935_v56 }
 0xdb3   :  { %v937_v57 = vpop.xlane.xlu1 %936 }
 0xdb4   :  { %v939_v58 = vmul.f32 0.0625, %v937_v57 }
 0xdb6   :  { %v940_v59 = vsub.f32 %v931_v54, %v939_v58 }
 0xdb8   :  { %v941_v60 = vmul.f32 %v940_v59, %v940_v59 }
 0xdba   :  { %v942_v61 = vsel %vm934_vm14, %v941_v60, 0.0 }
 0xdbb   :  { %943 = vadd.xlane.f32.xlu0 %v942_v61 }
 0xe44   :  { %v944_v0 = vpop.xlane.xlu0 %943 }
 0xe45   :  { %v945_v2 = vmul.f32 0.0625, %v944_v0 }
 0xe47   :  { %v946_v3 = vadd.f32 1e-05, %v945_v2 }
 0xe49   :  { %1914 = vrsqrt.f32 %v946_v3  ;;  %v1457_v3 = vsub.s32 2, %v2128_v4 }
 0xe56   :  { %v1915_v8 = vpop.eup %1914 }
 0xe57   :  { %v948_v10 = vmul.f32 %v1915_v8, %v940_v59 }
 0xe59   :  { %v952_v11 = vmul.f32 %v950_v6, %v948_v10  ;;  %v1453_v6 = vrot.slane %v2307_v50, %v2131_v5 }
 0xe5b   :  { %v955_v12 = vadd.f32 %v953_v9, %v952_v11  ;;  %v1458_v9 = vrot.slane %v2307_v50, %v1457_v3 }
 0xe5d   :  { %1916 = vtanh.f32 %v955_v12 }
 0xe6a   :  { %v1917_v13 = vpop.eup %1916 }
 0xe6b   :  { %1850 = vmatmul.mubr.msk.f32.vlgmr.msra.gmra.mxu0 %vm961_vm15, %v1917_v13 }
 0xe6c   :  { %1860 = vmatpush3.msk.msra.mxu0 %vm245_vm3, %v2216_v46  ;;  %1861 = vmatprep.mubr.msk.f32.mxu0 %vm1979_vm2, %v1978_v1 }
 0xe6d   :  { %1869 = vmatprep.subr.mxu0 %v1978_v1 }
 0xe6f   :  { %1862 = vmatmul.mubr.msk.f32.vlgmr.msra.gmra.mxu0 %vm241_vm8, %v1134_v27 }
 0xe70   :  { %1871 = vmatprep.mubr.msk.f32.mxu0 %vm1979_vm2, %v1978_v1  ;;  %1870 = vmatpush3.msra.mxu0 %v1284_v41 }
 0xe71   :  { %1879 = vmatprep.subr.mxu0 %v1978_v1 }
 0xf2b   :  { %v1031_v15 = vpop.f32.mrf.mxu0 }
 0xf2c   :  { %v1032_v16 = vadd.f32 %v1031_v15, %v959_v14  ;;  %v1465_v14 = vsub.s32 3, %v2128_v4 }
 0xf2d   :  { %v1851_v17 = vpop.f32.mrf.mxu0 }
 0xf2e   :  { %v1035_v18 = vsel %vm934_vm14, %v1032_v16, 0.0  ;;  %v1466_v15 = vrot.slane %v2307_v50, %v1465_v14 }
 0xf2f   :  { %1036 = vadd.xlane.f32.xlu0 %v1035_v18  ;;  %v1204_v39 = vpop.f32.mrf.mxu0 }
 0xf31   :  { %v1863_v42 = vpop.f32.mrf.mxu0 }
 0xfb8   :  { %v1037_v19 = vpop.xlane.xlu0 %1036 }
 0xfb9   :  { %v1038_v21 = vmul.f32 0.0625, %v1037_v19 }
 0xfbb   :  { %v1039_v22 = vsub.f32 %v1032_v16, %v1038_v21 }
 0xfbd   :  { %v1040_v23 = vmul.f32 %v1039_v22, %v1039_v22 }
 0xfbf   :  { %v1041_v24 = vsel %vm934_vm14, %v1040_v23, 0.0 }
 0xfc0   :  { %1042 = vadd.xlane.f32.xlu0 %v1041_v24 }
0x1049   :  { %v1043_v28 = vpop.xlane.xlu0 %1042 }
0x104a   :  { %v1044_v29 = vmul.f32 0.0625, %v1043_v28 }
0x104c   :  { %v1045_v30 = vadd.f32 1e-05, %v1044_v29 }
0x104e   :  { %1918 = vrsqrt.f32 %v1045_v30  ;;  %v1555_v30 = vsub.s32 4, %v2128_v4 }
0x105b   :  { %v1919_v32 = vpop.eup %1918 }
0x105c   :  { %v1047_v34 = vmul.f32 %v1919_v32, %v1039_v22  ;;  %v1556_v32 = vrot.slane %v2307_v50, %v1555_v30 }
0x105e   :  { %v1050_v35 = vmul.f32 %v1048_v31, %v1047_v34  ;;  %v1560_v31 = vsub.s32 5, %v2128_v4 }
0x1060   :  { %v1053_v36 = vadd.f32 %v1051_v33, %v1050_v35  ;;  %v1561_v34 = vrot.slane %v2307_v50, %v1560_v31 }
0x1062   :  { %1920 = vtanh.f32 %v1053_v36 }
0x106f   :  { %v1921_v37 = vpop.eup %1920 }
0x1070   :  { %1857 = vmatmul.mubr.msk.f32.vlgmr.msra.gmra.mxu1 %vm961_vm15, %v1921_v37 }
0x1071   :  { %1865 = vmatpush3.msk.msra.mxu1 %vm245_vm3, %v2216_v46  ;;  %1866 = vmatprep.mubr.msk.f32.mxu1 %vm1979_vm2, %v1978_v1  ;;  %vm1680_vm3 = vcmask 16384  }
0x1072   :  { %1874 = vmatprep.subr.mxu1 %v1978_v1 }
0x1074   :  { %1867 = vmatmul.mubr.msk.f32.vlgmr.msra.gmra.mxu1 %vm241_vm8, %v1208_v38 }
0x1075   :  { %1876 = vmatprep.mubr.msk.f32.mxu1 %vm1979_vm2, %v1978_v1  ;;  %1875 = vmatpush3.msra.mxu1 %v1283_v40 }
0x1076   :  { %1886 = vmatprep.subr.mxu1 %v1978_v1 }
0x1078   :  { %1877 = vmatmul.mubr.msk.f32.vlgmr.msra.gmra.mxu1 %vm325_vm9, %v1204_v39 }
0x1079   :  { %1890 = vmatprep.mubr.msk.f32.mxu1 %vm1979_vm2, %v1978_v1  ;;  %1887 = vmatpush3.msra.mxu1 %v1565_v25 }
0x107a   :  { %1888 = vmatprep.subr.mxu1 %v1978_v1 }
0x107b   :  { %1889 = vmatpush3.msra.mxu1 %v1564_v26 }
0x1130   :  { %v1128_v44 = vpop.f32.mrf.mxu1 }
0x1131   :  { %v1129_v20 = vadd.f32 %v1128_v44, %v1057_v43  ;;  %v1677_v44 = vld [vmem:[%s2379_s23] sm:$0x1]  ;;  %s1981_s23 = smov [#allocation4]  }
0x1132   :  { %v1858_v45 = vpop.f32.mrf.mxu1  ;;  %vm1692_vm4 = vcmp.gt.f32.partialorder %v1677_v44, 0.5  ;;  %s1728_s12 = sshll.u32 %s1981_s23, 4  ;;  %s1729_s12 = int_to_ptr.vmem [resolvable:$true] %s1728_s12 }
0x1133   :  { %1133 = vst.msk [vmem:[#allocation4] sm:$0x1] %vm1132_vm0, %v1129_v20  ;;  %s1934_s26 = scalar_lea.vmem %s1729_s12, 16  ;;  %s1938_s15 = scalar_lea.vmem %s1729_s12, 32 }
0x1134   :  { %v1278_v46 = vpop.f32.mrf.mxu1  ;;  %p1935_p0 = scmp.ne.s32.totalorder %s1729_s12, %s1934_s26  ;;  %p1939_p1 = scmp.lt.s32.totalorder %s1729_s12, %s1729_s12 }
0x1135   :  { %1872 = vmatmul.mubr.msk.f32.vlgmr.msra.gmra.mxu0 %vm325_vm9, %v1278_v46  ;;  %p1940_p2 = scmp.lt.s32.totalorder %s1938_s15, %s1934_s26 }
0x1136   :  { %v1868_v47 = vpop.f32.mrf.mxu1  ;;  %1883 = vmatprep.mubr.msk.f32.mxu0 %vm1979_vm2, %v1978_v1  ;;  %1880 = vmatpush3.msra.mxu0 %v1462_v62  ;;  %vm1678_vm2 = vcmp.gt.f32.partialorder %v1677_v44, 0.0 }
0x1137   :  { %1881 = vmatprep.subr.mxu0 %v1978_v1  ;;  %v1568_v1 = vsub.s32 6, %v2128_v4  ;;  %p1941_p3 = por %p1940_p2, %p1939_p1 }
0x1138   :  { %v1427_v48 = vpop.f32.mrf.mxu1  ;;  %1882 = vmatpush3.msra.mxu0 %v1461_v7 }
0x1139   :  { %v1569_v39 = vrot.slane %v2307_v50, %v1568_v1  ;;  %p1942_p4 = pnand %p1941_p3, %p1935_p0 }
0x113a   :  { %v1878_v49 = vpop.f32.mrf.mxu1 }
0x113b   :  { %v1980_v49 = vmov 0  }
0x113c   :  { %v1693_v50 = vsel %vm1692_vm4, 1, %v1980_v49 }
0x11f5   :  { %v1354_v52 = vpop.f32.mrf.mxu0 }
0x11f6   :  { %v1428_v53 = vadd.f32 %v1427_v48, %v1354_v52 }
0x11f7   :  { %v1873_v54 = vpop.f32.mrf.mxu0 }
0x11f8   :  { %v1435_v55 = vadd.f32 %v1434_v51, %v1428_v53  ;;  %v1694_v51 = vsel %vm1680_vm3, %v1693_v50, 0 }
0x11f9   :  { %v1696_v52 = vshrl.u32 %v1694_v51, 16 }
0x11fa   :  { %v1437_v56 = vsel %vm1436_vm1, %v1435_v55, 0.0 }
0x11fb   :  { %1438 = vadd.xlane.f32.xlu0 %v1437_v56  ;;  %v1695_v56 = vand.u32 65535, %v1694_v51 }
0x1284   :  { %v1439_v57 = vpop.xlane.xlu0 %1438 }
0x1285   :  { %v1440_v58 = vmul.f32 0.0625, %v1439_v57  ;;  %v1697_v57 = vcvt.s32.f32 %v1695_v56 }
0x1287   :  { %v1441_v59 = vsub.f32 %v1435_v55, %v1440_v58  ;;  %v1698_v55 = vcvt.s32.f32 %v1696_v52 }
0x1289   :  { %v1442_v60 = vmul.f32 %v1441_v59, %v1441_v59 }
0x128b   :  { %v1443_v61 = vsel %vm1436_vm1, %v1442_v60, 0.0 }
0x128c   :  { %1444 = vadd.xlane.f32.xlu0 %v1443_v61 }
0x1315   :  { %v1445_v63 = vpop.xlane.xlu0 %1444 }
0x1316   :  { %v1446_v0 = vmul.f32 0.0625, %v1445_v63 }
0x1318   :  { %v1447_v2 = vadd.f32 1e-05, %v1446_v0 }
0x131a   :  { %1922 = vrsqrt.f32 %v1447_v2 }
0x1327   :  { %v1923_v8 = vpop.eup %1922 }
0x1328   :  { %v1449_v10 = vmul.f32 %v1923_v8, %v1441_v59 }
0x132a   :  { %v1454_v11 = vmul.f32 %v1453_v6, %v1449_v10 }
0x132c   :  { %v1459_v12 = vadd.f32 %v1458_v9, %v1454_v11 }
0x132e   :  { %1924 = vtanh.f32 %v1459_v12 }
0x133b   :  { %v1925_v13 = vpop.eup %1924 }
0x133c   :  { %1884 = vmatmul.mubr.msk.f32.vlgmr.msra.gmra.mxu0 %vm961_vm15, %v1925_v13 }
0x13fc   :  { %v1536_v16 = vpop.f32.mrf.mxu0 }
0x13fd   :  { %v1537_v17 = vadd.f32 %v1536_v16, %v1466_v15 }
0x13fe   :  { %v1885_v18 = vpop.f32.mrf.mxu0 }
0x13ff   :  { %v1540_v19 = vsel %vm1436_vm1, %v1537_v17, 0.0 }
0x1400   :  { %1541 = vadd.xlane.f32.xlu0 %v1540_v19 }
0x1489   :  { %v1542_v5 = vpop.xlane.xlu0 %1541 }
0x148a   :  { %v1543_v21 = vmul.f32 0.0625, %v1542_v5 }
0x148c   :  { %v1544_v22 = vsub.f32 %v1537_v17, %v1543_v21 }
0x148e   :  { %v1545_v23 = vmul.f32 %v1544_v22, %v1544_v22 }
0x1490   :  { %v1546_v24 = vsel %vm1436_vm1, %v1545_v23, 0.0 }
0x1491   :  { %1547 = vadd.xlane.f32.xlu0 %v1546_v24 }
0x151a   :  { %v1548_v27 = vpop.xlane.xlu0 %1547 }
0x151b   :  { %v1549_v28 = vmul.f32 0.0625, %v1548_v27 }
0x151d   :  { %v1550_v29 = vadd.f32 1e-05, %v1549_v28 }
0x151f   :  { %1926 = vrsqrt.f32 %v1550_v29 }
0x152c   :  { %v1927_v33 = vpop.eup %1926 }
0x152d   :  { %v1552_v35 = vmul.f32 %v1927_v33, %v1544_v22 }
0x152f   :  { %v1557_v36 = vmul.f32 %v1556_v32, %v1552_v35 }
0x1531   :  { %v1562_v37 = vadd.f32 %v1561_v34, %v1557_v36 }
0x1533   :  { %1928 = vtanh.f32 %v1562_v37 }
0x1540   :  { %v1929_v38 = vpop.eup %1928 }
0x1541   :  { %1891 = vmatmul.mubr.msk.f32.vlgmr.msra.gmra.mxu1 %vm961_vm15, %v1929_v38 }
0x1601   :  { %v1639_v40 = vpop.f32.mrf.mxu1 }
0x1602   :  { %v1640_v41 = vadd.f32 %v1639_v40, %v1569_v39 }
0x1603   :  { %v1892_v42 = vpop.f32.mrf.mxu1 }
0x1604   :  { %v1768_v43 = vclamps-f32 %v1640_v41, 10.0 }
0x1606   :  { %1645 = vxpose.xlu0.b32.start.end [1/1] (short) (narrow) %v1768_v43, 8 }
0x1682   :  { %v1661_v20 = vpop.trf.xlu0 }
0x1683   :  { %v1679_v45 = vsel %vm1678_vm2, %v1661_v20, -1e+30 }
0x1684   :  { %v1681_v46 = vsel %vm1680_vm3, %v1679_v45, -inf }
0x1685   :  { %1682 = vmax.xlane.f32.xlu1 %v1681_v46 }
0x170e   :  { %v1683_v47 = vpop.xlane.xlu1 %1682 }
0x170f   :  { %v1684_v4 = vsub.f32 %v1679_v45, %v1683_v47 }
0x1711   :  { %v1685_v48 = vmul.f32 1.442695, %v1684_v4 }
0x1713   :  { %1930 = vpow2.f32 %v1685_v48 }
0x1720   :  { %v1931_v53 = vpop.eup %1930 }
0x1721   :  { %v1687_v54 = vsel %vm1680_vm3, %v1931_v53, 0.0 }
0x1722   :  { %1688 = vadd.xlane.f32.xlu1 %v1687_v54 }
0x1726   :  { %1701 = vadd.xlane.f32.xlu1 %v1698_v55 }
0x172a   :  { %1699 = vadd.xlane.f32.xlu1 %v1697_v57 }
0x172b   :  { %1945 = shalt.err (!%p1942_p4)
}
0x172c   :  { %1731 = dma.vmem_to_hbm [thread:$0]  %s1729_s12, 16, %s2381_s25, [#allocation5]  }
0x172d   :  { %s1982_s8 = smov [#allocation2]  }
0x172e   :  { %s1718_s27 = sshll.u32 %s1982_s8, 4  ;;  %s1719_s27 = int_to_ptr.vmem [resolvable:$true] %s1718_s27 }
0x172f   :  { %s1954_s4 = scalar_lea.vmem %s1719_s27, 16  ;;  %s1958_s25 = scalar_lea.vmem %s1719_s27, 32 }
0x1730   :  { %p1955_p5 = scmp.ne.s32.totalorder %s1719_s27, %s1954_s4  ;;  %p1959_p6 = scmp.lt.s32.totalorder %s1719_s27, %s1719_s27 }
0x1731   :  { %p1960_p7 = scmp.lt.s32.totalorder %s1958_s25, %s1954_s4 }
0x1733   :  { %p1961_p8 = por %p1960_p7, %p1959_p6 }
0x1735   :  { %p1962_p9 = pnand %p1961_p8, %p1955_p5 }
0x17ab   :  { %v1689_v58 = vpop.xlane.xlu1 %1688 }
0x17ac   :  { %1932 = vrcp.f32 %v1689_v58 }
0x17af   :  { %v1702_v59 = vpop.xlane.xlu1 %1701 }
0x17b0   :  { %v1704_v60 = vcvt.f32.s32 %v1702_v59 }
0x17b2   :  { %v1705_v61 = vshll.u32 %v1704_v60, 16 }
0x17b3   :  { %v1700_v62 = vpop.xlane.xlu1 %1699 }
0x17b4   :  { %v1703_v7 = vcvt.f32.s32 %v1700_v62 }
0x17b6   :  { %v1706_v63 = vadd.s32 %v1705_v61, %v1703_v7 }
0x17b8   :  { %vm1707_vm5 = vcmp.eq.s32.totalorder %v1706_v63, 1 }
0x17b9   :  { %v1933_v0 = vpop.eup %1932 }
0x17ba   :  { %v1691_v2 = vmul.f32 %v1933_v0, %v1931_v53 }
0x17bc   :  { %v1710_v3 = vsel %vm1707_vm5, %v1677_v44, %v1691_v2 }
0x17bd   :  { %1711 = vst.msk [vmem:[#allocation2] sm:$0x1] %vm1680_vm3, %v1710_v3 }
0x17be   :  { %1965 = shalt.err (!%p1962_p9)
}
0x17bf   :  { %1721 = dma.vmem_to_hbm [thread:$0]  %s1719_s27, 16, %s2380_s24, [#allocation3]  }
0x17c0   :  { %1974 = dma.done.wait [#allocation3], 16  }
0x17c1   :  { %1975 = vsyncadd [#allocation3], 4294967280 }
0x17c2   :  { %1976 = dma.done.wait [#allocation5], 16  }
0x17c3   :  { %1977 = vsyncadd [#allocation5], 4294967280 }
0x17c4   :  { %1738 = vsyncpa [#allocation3], 1 }
0x17c5   :  { %1739 = vsyncpa [#allocation5], 1 }

</bundles_post_ra>
